<compile_context>
chip_gen: v7x
topology: tpu7x:2x2x1
jax: 0.10.0
libtpu: 0.0.40
codegen_flags: <defaults>
</compile_context>

<pallas_src>
import functools

import jax
import jax.numpy as jnp
from jax.experimental import pallas as pl
from jax.experimental.pallas import tpu as pltpu


def _affine_kernel(x_ref, w_ref, b_ref, out_ref):
    """out = x @ W_eff + b_eff for one batch tile.

    x_ref  : (NB, K) f32   lane-dense flattened input tile (K = C*H*W)
    w_ref  : (K, M)  f32   folded conv+mean+linear weight
    b_ref  : (1, M)  f32   folded bias
    out_ref: (NB, M) f32
    """
    out_ref[...] = (
        jnp.dot(x_ref[...], w_ref[...], preferred_element_type=jnp.float32)
        + b_ref[...]
    ).astype(out_ref.dtype)


def _fold_params(conv_w, conv_b, lin_w, lin_b, h, w):
    """Parameter-only fold of conv -> mean -> linear into (W_eff, b_eff)."""
    _, cin, kh, kw = conv_w.shape
    m = lin_w.shape[1]
    oh, ow = h - kh + 1, w - kw + 1
    inv_p = 1.0 / float(oh * ow)

    # Linear head folded into each conv tap:
    #   tap_w[i, j, c, m] = sum_o conv_w[o, c, i, j] * lin_w[o, m]
    tap_w = jnp.einsum("ocij,om->ijcm",
                       conv_w.astype(jnp.float32), lin_w.astype(jnp.float32))

    # Spatial mean folded through the conv: input position (h', w') contributes
    # tap (i, j) iff it lies inside that tap's valid-window span; scatter-add each
    # tap over its (oh, ow) span (border positions naturally get fewer taps).
    w_eff = jnp.zeros((cin, h, w, m), jnp.float32)
    for i in range(kh):
        for j in range(kw):
            w_eff = w_eff.at[:, i:i + oh, j:j + ow, :].add(
                tap_w[i, j][:, None, None, :])
    # Row order matches x.reshape(n, cin*h*w); 1/P mean scale folded in here.
    w_eff = (w_eff * inv_p).reshape(cin * h * w, m)

    b_eff = (conv_b.astype(jnp.float32) @ lin_w.astype(jnp.float32)
             + lin_b.astype(jnp.float32)).reshape(1, m)
    return w_eff, b_eff


@functools.partial(jax.jit, static_argnames=("block_n",))
def simple_model_forward(x, conv_w, conv_b, lin_w, lin_b, *, block_n=None):
    """x: (N, 3, H, W) NCHW f32; conv_w: (8,3,3,3); conv_b: (8,);
    lin_w: (8, 2) (torch weight already transposed); lin_b: (2,)."""
    n, cin, h, w = x.shape
    m = lin_w.shape[1]
    k = cin * h * w

    w_eff, b_eff = _fold_params(conv_w, conv_b, lin_w, lin_b, h, w)

    # Lane-dense presentation of the input: (N, C*H*W).  For the module's shapes
    # K = 768 = 6*128 lanes -> no lane padding, 3 KiB/sample in VMEM.
    x2d = x.reshape(n, k).astype(jnp.float32)

    # Batch tile: whole batch in one grid step when small; 512-row tiles (multiple
    # of 8 sublanes) with a parallel 1-D grid for large N.  512*768*4 = 1.5 MiB per
    # buffer -> comfortably under every generation's scoped-VMEM default.
    if block_n is None:
        block_n = n if n <= 512 else 512
    nb = block_n
    assert nb == n or nb % 8 == 0, "batch tile must equal N or be a multiple of 8"
    grid = (pl.cdiv(n, nb),)

    cost = pl.CostEstimate(
        flops=2 * n * k * m,
        transcendentals=0,
        bytes_accessed=4 * (n * k + k * m + m + n * m),
    )

    return pl.pallas_call(
        _affine_kernel,
        out_shape=jax.ShapeDtypeStruct((n, m), jnp.float32),
        grid=grid,
        in_specs=[
            pl.BlockSpec((nb, k), lambda b: (b, 0)),   # streamed batch tiles
            pl.BlockSpec((k, m), lambda b: (0, 0)),    # resident folded weight
            pl.BlockSpec((1, m), lambda b: (0, 0)),    # resident folded bias
        ],
        out_specs=pl.BlockSpec((nb, m), lambda b: (b, 0)),
        compiler_params=pltpu.CompilerParams(
            dimension_semantics=("parallel",)),
        cost_estimate=cost,
    )(x2d, w_eff, b_eff)


def _reference_forward(x, conv_w, conv_b, lin_w, lin_b):
    conv = jax.lax.conv_general_dilated(
        x, conv_w, window_strides=(1, 1), padding="VALID",
        dimension_numbers=("NCHW", "OIHW", "NCHW"),
    ) + conv_b.reshape(1, -1, 1, 1)
    pooled = conv.mean(axis=(2, 3))
    return pooled @ lin_w + lin_b.reshape(1, -1)


if __name__ == "__main__":
    key = jax.random.PRNGKey(0)
    kx, kx2, kcw, kcb, klw, klb = jax.random.split(key, 6)

    # Parameter shapes from SimpleModel.__init__ / forward:
    #   Conv2d(3, 8, 3) -> weight (8, 3, 3, 3), bias (8,)
    #   LazyLinear(2) with in_features=8 -> weight stored transposed as (8, 2), bias (2,)
    conv_w = jax.random.normal(kcw, (8, 3, 3, 3), dtype=jnp.float32) * 0.1
    conv_b = jax.random.normal(kcb, (8,), dtype=jnp.float32) * 0.1
    lin_w = jax.random.normal(klw, (8, 2), dtype=jnp.float32) * 0.1
    lin_b = jax.random.normal(klb, (2,), dtype=jnp.float32) * 0.1

    # Primary small-shape run (matches the PyTorch module: NCHW, Cin=3, 16x16).
    x = jax.random.normal(kx, (2, 3, 16, 16), dtype=jnp.float32)
    out = jax.block_until_ready(
        simple_model_forward(x, conv_w, conv_b, lin_w, lin_b))
    ref = _reference_forward(x, conv_w, conv_b, lin_w, lin_b)
    assert out.shape == (2, 2), out.shape
    assert jnp.allclose(out, ref, atol=1e-4, rtol=1e-4), (out, ref)

    # Review correctness concern: batch not a multiple of the tile (tests the
    # padded boundary block + clipped writeback of the tiled path).
    x2 = jax.random.normal(kx2, (20, 3, 16, 16), dtype=jnp.float32)
    out2 = jax.block_until_ready(
        simple_model_forward(x2, conv_w, conv_b, lin_w, lin_b, block_n=8))
    ref2 = _reference_forward(x2, conv_w, conv_b, lin_w, lin_b)
    assert out2.shape == (20, 2), out2.shape
    assert jnp.allclose(out2, ref2, atol=1e-4, rtol=1e-4), (out2, ref2)

    print("KERNEL_OK")
</pallas_src>

<mosaic_0001>
module attributes {stable_mosaic.version = 11 : i64} {
  func.func @_affine_kernel(%arg0: i32, %arg1: memref<2x768xf32, #tpu.memory_space<vmem>>, %arg2: memref<768x2xf32, #tpu.memory_space<vmem>>, %arg3: memref<1x2xf32, #tpu.memory_space<vmem>>, %arg4: memref<2x2xf32, #tpu.memory_space<vmem>>) attributes {dimension_semantics = [#tpu.dimension_semantics<parallel>], iteration_bounds = array<i64: 1>, scalar_prefetch = 0 : i64, scratch_operands = 0 : i64, tpu.core_type = #tpu.core_type<tc>, window_params = [{transform_indices = @transform_0, window_bounds = array<i64: 2, 768>}, {pipeline_mode = #tpu.pipeline_mode<synchronous>, transform_indices = @transform_1, window_bounds = array<i64: 768, 2>}, {pipeline_mode = #tpu.pipeline_mode<synchronous>, transform_indices = @transform_2, window_bounds = array<i64: 1, 2>}, {transform_indices = @transform_3, window_bounds = array<i64: 2, 2>}]} {
    %c0 = arith.constant 0 : index
    %c0_0 = arith.constant 0 : index
    %0 = vector.load %arg1[%c0, %c0_0] : memref<2x768xf32, #tpu.memory_space<vmem>>, vector<2x768xf32>
    %c0_1 = arith.constant 0 : index
    %c0_2 = arith.constant 0 : index
    %1 = vector.load %arg2[%c0_1, %c0_2] : memref<768x2xf32, #tpu.memory_space<vmem>>, vector<768x2xf32>
    %cst = arith.constant dense<0.000000e+00> : vector<2x2xf32>
    %2 = tpu.matmul %0, %1, %cst {dimension_numbers = #tpu.dot_dimension_numbers<[1], [0], [0], [1], [0, 0, 1, 1], [], []>} : vector<2x768xf32>, vector<768x2xf32>, vector<2x2xf32> -> vector<2x2xf32>
    %c0_3 = arith.constant 0 : index
    %c0_4 = arith.constant 0 : index
    %3 = vector.load %arg3[%c0_3, %c0_4] : memref<1x2xf32, #tpu.memory_space<vmem>>, vector<1x2xf32>
    %4 = vector.broadcast %3 : vector<1x2xf32> to vector<2x2xf32>
    %5 = arith.addf %2, %4 : vector<2x2xf32>
    %c0_5 = arith.constant 0 : index
    %c0_6 = arith.constant 0 : index
    %6 = vector.load %arg4[%c0_5, %c0_6] : memref<2x2xf32, #tpu.memory_space<vmem>>, vector<2x2xf32>
    tpu.vector_store %arg4[%c0_5, %c0_6], %5 {strides = array<i32>} : memref<2x2xf32, #tpu.memory_space<vmem>>, vector<2x2xf32>,
    return
  }
  func.func @transform_0(%arg0: i32) -> (i32, i32) {
    %c0_i32 = arith.constant 0 : i32
    %c0_i32_0 = arith.constant 0 : i32
    return %arg0, %c0_i32 : i32, i32
  }
  func.func @transform_1(%arg0: i32) -> (i32, i32) {
    %c0_i32 = arith.constant 0 : i32
    %c0_i32_0 = arith.constant 0 : i32
    %c0_i32_1 = arith.constant 0 : i32
    return %c0_i32, %c0_i32_0 : i32, i32
  }
  func.func @transform_2(%arg0: i32) -> (i32, i32) {
    %c0_i32 = arith.constant 0 : i32
    %c0_i32_0 = arith.constant 0 : i32
    %c0_i32_1 = arith.constant 0 : i32
    return %c0_i32, %c0_i32_0 : i32, i32
  }
  func.func @transform_3(%arg0: i32) -> (i32, i32) {
    %c0_i32 = arith.constant 0 : i32
    %c0_i32_0 = arith.constant 0 : i32
    return %arg0, %c0_i32 : i32, i32
  }
}

</mosaic_0001>

<bundles_post_ra>
// kernel: simple_model_forward.1
= control target key start
LH: loop header
LB: loop body
LE: loop exit
PB: predicated region body
PF: predicated region fallthrough
CT: control target
= control target key end

     0   :  { %v609_v43 = vmov 1983009808   ;;  %v126_v45 = vlaneseq  ;;  %s940_s0 = inlined_call_operand.vmem [shape: f32[2,768], index: 0, kind: input, shape index: {}]   ;;  %s941_s1 = inlined_call_operand.vmem [shape: f32[768,2], index: 1, kind: input, shape index: {}]   ;;  %s942_s2 = inlined_call_operand.vmem [shape: f32[1,2], index: 2, kind: input, shape index: {}]   ;;  %s943_s3 = inlined_call_operand.hbm [shape: f32[2,2], index: 3, kind: output, shape index: {}]  }
   0x1   :  { %v33_v0 = vld [vmem:[%s941_s1 + $0x80] sm:$0xff]  ;;  %v34_v1 = vld [vmem:[%s941_s1 + $0x88] sm:$0xff]  ;;  %v35_v11 = vld [vmem:[%s941_s1 + $0x90] sm:$0xff]  ;;  %v124_v44 = vunpack.c.l.s4 %v609_v43 }
   0x2   :  { %v17_v2 = vld [vmem:[%s941_s1] sm:$0xff]  ;;  %v486_v3 = vpack.c.bf16 %v34_v1, %v33_v0  ;;  %v18_v4 = vld [vmem:[%s941_s1 + $0x8] sm:$0xff]  ;;  %v36_v13 = vld [vmem:[%s941_s1 + $0x98] sm:$0xff]  ;;  %v127_v60 = vshrl.u32 %v126_v45, 7 }
   0x3   :  { %v65_v5 = vld [vmem:[%s941_s1 + $0x180] sm:$0xff]  ;;  %v66_v6 = vld [vmem:[%s941_s1 + $0x188] sm:$0xff]  ;;  %v488_v7 = vpack.c.bf16 %v18_v4, %v17_v2  ;;  %v19_v14 = vld [vmem:[%s941_s1 + $0x10] sm:$0xff]  ;;  %v490_v16 = vpack.c.bf16 %v36_v13, %v35_v11  ;;  %v125_v59 = vunpack.c.0.s8 %v124_v44 }
   0x4   :  { %v518_v8 = vpack.c.bf16 %v66_v6, %v65_v5  ;;  %v49_v9 = vld [vmem:[%s941_s1 + $0x100] sm:$0xff]  ;;  %v50_v10 = vld [vmem:[%s941_s1 + $0x108] sm:$0xff]  ;;  %487 = vmatprep.subr.bf16.mxu0 %v486_v3  ;;  %v20_v15 = vld [vmem:[%s941_s1 + $0x18] sm:$0xff] }
   0x5   :  { %v520_v12 = vpack.c.bf16 %v50_v10, %v49_v9  ;;  %489 = vmatpush3.bf16.msra.mxu0 %v488_v7  ;;  %v492_v17 = vpack.c.bf16 %v20_v15, %v19_v14  ;;  %v67_v18 = vld [vmem:[%s941_s1 + $0x190] sm:$0xff]  ;;  %v68_v19 = vld [vmem:[%s941_s1 + $0x198] sm:$0xff]  ;;  %v37_v23 = vld [vmem:[%s941_s1 + $0xa0] sm:$0xff]  ;;  %v128_v10 = vsub.s32 %v125_v59, %v127_v60 }
   0x6   :  { %519 = vmatprep.subr.bf16.mxu1 %v518_v8  ;;  %v51_v20 = vld [vmem:[%s941_s1 + $0x110] sm:$0xff]  ;;  %v522_v21 = vpack.c.bf16 %v68_v19, %v67_v18  ;;  %v52_v22 = vld [vmem:[%s941_s1 + $0x118] sm:$0xff]  ;;  %v38_v24 = vld [vmem:[%s941_s1 + $0xa8] sm:$0xff]  ;;  %491 = vmatprep.subr.bf16.mxu0 %v490_v16 }
   0x7   :  { %521 = vmatpush3.bf16.msra.mxu1 %v520_v12  ;;  %v524_v25 = vpack.c.bf16 %v52_v22, %v51_v20  ;;  %v494_v26 = vpack.c.bf16 %v38_v24, %v37_v23  ;;  %v21_v27 = vld [vmem:[%s941_s1 + $0x20] sm:$0xff]  ;;  %v22_v28 = vld [vmem:[%s941_s1 + $0x28] sm:$0xff]  ;;  %v39_v35 = vld [vmem:[%s941_s1 + $0xb0] sm:$0xff] }
   0x8   :  { %v69_v29 = vld [vmem:[%s941_s1 + $0x1a0] sm:$0xff]  ;;  %523 = vmatprep.subr.bf16.mxu1 %v522_v21  ;;  %v70_v30 = vld [vmem:[%s941_s1 + $0x1a8] sm:$0xff]  ;;  %v496_v33 = vpack.c.bf16 %v22_v28, %v21_v27  ;;  %v40_v36 = vld [vmem:[%s941_s1 + $0xb8] sm:$0xff] }
   0x9   :  { %v53_v31 = vld [vmem:[%s941_s1 + $0x120] sm:$0xff]  ;;  %v54_v32 = vld [vmem:[%s941_s1 + $0x128] sm:$0xff]  ;;  %493 = vmatpush3.bf16.msra.mxu0 %v492_v17  ;;  %v526_v34 = vpack.c.bf16 %v70_v30, %v69_v29  ;;  %v23_v37 = vld [vmem:[%s941_s1 + $0x30] sm:$0xff]  ;;  %v498_v39 = vpack.c.bf16 %v40_v36, %v39_v35 }
   0xa   :  { %495 = vmatprep.subr.bf16.mxu0 %v494_v26  ;;  %v528_v38 = vpack.c.bf16 %v54_v32, %v53_v31  ;;  %v24_v40 = vld [vmem:[%s941_s1 + $0x38] sm:$0xff]  ;;  %v71_v41 = vld [vmem:[%s941_s1 + $0x1b0] sm:$0xff]  ;;  %v41_v49 = vld [vmem:[%s941_s1 + $0xc0] sm:$0xff] }
   0xb   :  { %525 = vmatpush3.bf16.msra.mxu1 %v524_v25  ;;  %v72_v42 = vld [vmem:[%s941_s1 + $0x1b8] sm:$0xff]  ;;  %v55_v47 = vld [vmem:[%s941_s1 + $0x130] sm:$0xff]  ;;  %v42_v50 = vld [vmem:[%s941_s1 + $0xc8] sm:$0xff]  ;;  %v500_v51 = vpack.c.bf16 %v24_v40, %v23_v37 }
   0xc   :  { %527 = vmatprep.subr.bf16.mxu1 %v526_v34  ;;  %v530_v46 = vpack.c.bf16 %v72_v42, %v71_v41  ;;  %v56_v48 = vld [vmem:[%s941_s1 + $0x138] sm:$0xff]  ;;  %v73_v52 = vld [vmem:[%s941_s1 + $0x1c0] sm:$0xff]  ;;  %v74_v53 = vld [vmem:[%s941_s1 + $0x1c8] sm:$0xff]  ;;  %v502_v55 = vpack.c.bf16 %v42_v50, %v41_v49 }
   0xd   :  { %497 = vmatpush3.bf16.msra.mxu0 %v496_v33  ;;  %v532_v54 = vpack.c.bf16 %v56_v48, %v55_v47  ;;  %v25_v56 = vld [vmem:[%s941_s1 + $0x40] sm:$0xff]  ;;  %v26_v57 = vld [vmem:[%s941_s1 + $0x48] sm:$0xff]  ;;  %v534_v61 = vpack.c.bf16 %v74_v53, %v73_v52  ;;  %v43_v63 = vld [vmem:[%s941_s1 + $0xd0] sm:$0xff] }
   0xe   :  { %499 = vmatprep.subr.bf16.mxu0 %v498_v39  ;;  %v57_v58 = vld [vmem:[%s941_s1 + $0x140] sm:$0xff]  ;;  %v58_v62 = vld [vmem:[%s941_s1 + $0x148] sm:$0xff]  ;;  %v44_v0 = vld [vmem:[%s941_s1 + $0xd8] sm:$0xff]  ;;  %v504_v3 = vpack.c.bf16 %v26_v57, %v25_v56 }
   0xf   :  { %529 = vmatpush3.bf16.msra.mxu1 %v528_v38  ;;  %v75_v1 = vld [vmem:[%s941_s1 + $0x1d0] sm:$0xff]  ;;  %v76_v2 = vld [vmem:[%s941_s1 + $0x1d8] sm:$0xff]  ;;  %v536_v5 = vpack.c.bf16 %v58_v62, %v57_v58  ;;  %v506_v6 = vpack.c.bf16 %v44_v0, %v43_v63  ;;  %v45_v12 = vld [vmem:[%s941_s1 + $0xe0] sm:$0xff] }
  0x10   :  { %531 = vmatprep.subr.bf16.mxu1 %v530_v46  ;;  %v27_v4 = vld [vmem:[%s941_s1 + $0x50] sm:$0xff]  ;;  %v28_v7 = vld [vmem:[%s941_s1 + $0x58] sm:$0xff]  ;;  %v538_v11 = vpack.c.bf16 %v76_v2, %v75_v1  ;;  %v46_v13 = vld [vmem:[%s941_s1 + $0xe8] sm:$0xff] }
  0x11   :  { %501 = vmatpush3.bf16.msra.mxu0 %v500_v51  ;;  %v59_v8 = vld [vmem:[%s941_s1 + $0x150] sm:$0xff]  ;;  %v60_v9 = vld [vmem:[%s941_s1 + $0x158] sm:$0xff]  ;;  %v77_v14 = vld [vmem:[%s941_s1 + $0x1e0] sm:$0xff]  ;;  %v508_v16 = vpack.c.bf16 %v28_v7, %v27_v4  ;;  %v510_v19 = vpack.c.bf16 %v46_v13, %v45_v12 }
  0x12   :  { %503 = vmatprep.subr.bf16.mxu0 %v502_v55  ;;  %v78_v15 = vld [vmem:[%s941_s1 + $0x1e8] sm:$0xff]  ;;  %v540_v17 = vpack.c.bf16 %v60_v9, %v59_v8  ;;  %v15_v18 = vld [vmem:[%s940_s0] sm:$0xff]  ;;  %v47_v27 = vld [vmem:[%s941_s1 + $0xf0] sm:$0xff] }
  0x13   :  { %533 = vmatpush3.bf16.msra.mxu1 %v532_v54  ;;  %v29_v20 = vld [vmem:[%s941_s1 + $0x60] sm:$0xff]  ;;  %v30_v21 = vld [vmem:[%s941_s1 + $0x68] sm:$0xff]  ;;  %v129_v23 = vrot.slane %v15_v18, %v128_v10  ;;  %v122_v24 = vcombine.high %v15_v18, %v15_v18  ;;  %v542_v25 = vpack.c.bf16 %v78_v15, %v77_v14  ;;  %v48_v28 = vld [vmem:[%s941_s1 + $0xf8] sm:$0xff] }
  0x14   :  { %535 = vmatprep.subr.bf16.mxu1 %v534_v61  ;;  %v61_v22 = vld [vmem:[%s941_s1 + $0x160] sm:$0xff]  ;;  %v62_v26 = vld [vmem:[%s941_s1 + $0x168] sm:$0xff]  ;;  %v79_v29 = vld [vmem:[%s941_s1 + $0x1f0] sm:$0xff]  ;;  %v512_v33 = vpack.c.bf16 %v30_v21, %v29_v20  ;;  %v514_v35 = vpack.c.bf16 %v48_v28, %v47_v27 }
  0x15   :  { %505 = vmatpush3.bf16.msra.mxu0 %v504_v3  ;;  %v80_v30 = vld [vmem:[%s941_s1 + $0x1f8] sm:$0xff]  ;;  %v137_v31 = vcombine.high %v129_v23, %v129_v23  ;;  %v136_v32 = vrot.slane %v122_v24, %v128_v10  ;;  %v544_v34 = vpack.c.bf16 %v62_v26, %v61_v22  ;;  %v31_v36 = vld [vmem:[%s941_s1 + $0x70] sm:$0xff]  ;;  %v97_v42 = vld [vmem:[%s941_s1 + $0x280] sm:$0xff] }
  0x16   :  { %507 = vmatprep.subr.bf16.mxu0 %v506_v6  ;;  %v32_v37 = vld [vmem:[%s941_s1 + $0x78] sm:$0xff]  ;;  %v63_v38 = vld [vmem:[%s941_s1 + $0x170] sm:$0xff]  ;;  %v546_v40 = vpack.c.bf16 %v80_v30, %v79_v29  ;;  %v98_v43 = vld [vmem:[%s941_s1 + $0x288] sm:$0xff] }
  0x17   :  { %537 = vmatpush3.bf16.msra.mxu1 %v536_v5  ;;  %v138_v39 = vcombine.high %v136_v32, %v136_v32  ;;  %217 = vmatprep.mubr.f32.mxu0 %v137_v31  ;;  %v64_v41 = vld [vmem:[%s941_s1 + $0x178] sm:$0xff]  ;;  %v516_v44 = vpack.c.bf16 %v32_v37, %v31_v36  ;;  %v550_v46 = vpack.c.bf16 %v98_v43, %v97_v42  ;;  %v81_v47 = vld [vmem:[%s941_s1 + $0x200] sm:$0xff]  ;;  %v82_v48 = vld [vmem:[%s941_s1 + $0x208] sm:$0xff] }
  0x18   :  { %539 = vmatprep.subr.bf16.mxu1 %v538_v11  ;;  %v548_v45 = vpack.c.bf16 %v64_v41, %v63_v38  ;;  %v99_v49 = vld [vmem:[%s941_s1 + $0x290] sm:$0xff]  ;;  %v100_v50 = vld [vmem:[%s941_s1 + $0x298] sm:$0xff]  ;;  %v552_v51 = vpack.c.bf16 %v82_v48, %v81_v47  ;;  %v380_v52 = vld.sshfl [vmem:[%s940_s0 + $0x8] sm:$0x33 pattern:$0x76325410] }
  0x19   :  { %509 = vmatpush3.bf16.msra.mxu0 %v508_v16  ;;  %287 = vmatprep.mubr.f32.mxu1 %v138_v39  ;;  %v554_v53 = vpack.c.bf16 %v100_v50, %v99_v49  ;;  %v83_v54 = vld [vmem:[%s941_s1 + $0x210] sm:$0xff]  ;;  %v84_v55 = vld [vmem:[%s941_s1 + $0x218] sm:$0xff]  ;;  %v146_v56 = vcombine.high %v380_v52, %v380_v52 }
  0x1a   :  { %511 = vmatprep.subr.bf16.mxu0 %v510_v19 }
  0x1b   :  { %541 = vmatpush3.bf16.msra.mxu1 %v540_v17 }
  0x1c   :  { %543 = vmatprep.subr.bf16.mxu1 %v542_v25 }
  0x1d   :  { %513 = vmatpush3.bf16.msra.mxu0 %v512_v33 }
  0x1e   :  { %515 = vmatprep.subr.bf16.mxu0 %v514_v35 }
  0x1f   :  { %545 = vmatpush3.bf16.msra.mxu1 %v544_v34 }
  0x20   :  { %547 = vmatprep.subr.bf16.mxu1 %v546_v40 }
  0x21   :  { %517 = vmatpush3.bf16.msra.mxu0 %v516_v44 }
  0x22   :  { %551 = vmatprep.subr.bf16.mxu0 %v550_v46 }
  0x23   :  { %549 = vmatpush3.bf16.msra.mxu1 %v548_v45 }
  0x24   :  { %8 = vsyncpa [#allocation3], 0  ;;  %v101_v57 = vld [vmem:[%s941_s1 + $0x2a0] sm:$0xff]  ;;  %v102_v58 = vld [vmem:[%s941_s1 + $0x2a8] sm:$0xff]  ;;  %218 = vmatmul.mubr.f32.vlgmr.msra.gmra.mrb[0].mxu0 %v129_v23  ;;  %v556_v59 = vpack.c.bf16 %v84_v55, %v83_v54  ;;  %vm363_vm0 = vcmask 9216  }
  0x25   :  { %553 = vmatpush3.bf16.msra.mxu0 %v552_v51  ;;  %v558_v60 = vpack.c.bf16 %v102_v58, %v101_v57  ;;  %v85_v61 = vld [vmem:[%s941_s1 + $0x220] sm:$0xff]  ;;  %v86_v62 = vld [vmem:[%s941_s1 + $0x228] sm:$0xff]  ;;  %357 = vmatprep.mubr.f32.mxu0 %v146_v56  ;;  %v103_v63 = vld [vmem:[%s941_s1 + $0x2b0] sm:$0xff] }
  0x26   :  { %288 = vmatmul.mubr.f32.vlgmr.msra.gmra.mrb[0].mxu1 %v136_v32  ;;  %555 = vmatprep.subr.bf16.mxu0 %v554_v53  ;;  %v104_v0 = vld [vmem:[%s941_s1 + $0x2b8] sm:$0xff]  ;;  %v560_v1 = vpack.c.bf16 %v86_v62, %v85_v61  ;;  %v87_v3 = vld [vmem:[%s941_s1 + $0x230] sm:$0xff]  ;;  %v105_v5 = vld [vmem:[%s941_s1 + $0x2c0] sm:$0xff] }
  0x27   :  { %v562_v2 = vpack.c.bf16 %v104_v0, %v103_v63  ;;  %v88_v4 = vld [vmem:[%s941_s1 + $0x238] sm:$0xff]  ;;  %v106_v6 = vld [vmem:[%s941_s1 + $0x2c8] sm:$0xff]  ;;  %v89_v9 = vld [vmem:[%s941_s1 + $0x240] sm:$0xff] }
  0x28   :  { %v564_v7 = vpack.c.bf16 %v88_v4, %v87_v3  ;;  %v566_v8 = vpack.c.bf16 %v106_v6, %v105_v5  ;;  %v90_v10 = vld [vmem:[%s941_s1 + $0x248] sm:$0xff]  ;;  %v107_v11 = vld [vmem:[%s941_s1 + $0x2d0] sm:$0xff]  ;;  %v108_v12 = vld [vmem:[%s941_s1 + $0x2d8] sm:$0xff] }
  0x29   :  { %557 = vmatpush3.bf16.msra.mxu0 %v556_v59  ;;  %v568_v13 = vpack.c.bf16 %v90_v10, %v89_v9  ;;  %v570_v14 = vpack.c.bf16 %v108_v12, %v107_v11  ;;  %v91_v15 = vld [vmem:[%s941_s1 + $0x250] sm:$0xff]  ;;  %v92_v16 = vld [vmem:[%s941_s1 + $0x258] sm:$0xff]  ;;  %v109_v17 = vld [vmem:[%s941_s1 + $0x2e0] sm:$0xff] }
  0x2a   :  { %559 = vmatprep.subr.bf16.mxu0 %v558_v60  ;;  %v110_v18 = vld [vmem:[%s941_s1 + $0x2e8] sm:$0xff]  ;;  %v572_v19 = vpack.c.bf16 %v92_v16, %v91_v15  ;;  %v93_v21 = vld [vmem:[%s941_s1 + $0x260] sm:$0xff]  ;;  %v111_v23 = vld [vmem:[%s941_s1 + $0x2f0] sm:$0xff] }
  0x2b   :  { %v574_v20 = vpack.c.bf16 %v110_v18, %v109_v17  ;;  %v94_v22 = vld [vmem:[%s941_s1 + $0x268] sm:$0xff]  ;;  %v112_v24 = vld [vmem:[%s941_s1 + $0x2f8] sm:$0xff]  ;;  %v95_v27 = vld [vmem:[%s941_s1 + $0x270] sm:$0xff] }
  0x2c   :  { %v576_v25 = vpack.c.bf16 %v94_v22, %v93_v21  ;;  %v578_v26 = vpack.c.bf16 %v112_v24, %v111_v23  ;;  %v96_v28 = vld [vmem:[%s941_s1 + $0x278] sm:$0xff]  ;;  %v379_v31 = vld [vmem:[%s942_s2] ss:$0 sm:$0xff]  ;;  %s610_s1 = smov [#allocation2]  }
  0x2d   :  { %561 = vmatpush3.bf16.msra.mxu0 %v560_v1  ;;  %v580_v29 = vpack.c.bf16 %v96_v28, %v95_v27  ;;  %s371_s19 = sshll.u32 %s610_s1, 4  ;;  %s372_s19 = int_to_ptr.vmem [resolvable:$true] %s371_s19 }
  0x2e   :  { %563 = vmatprep.subr.bf16.mxu0 %v562_v2  ;;  %s585_s20 = scalar_lea.vmem %s372_s19, 32  ;;  %p590_p1 = scmp.lt.s32.totalorder %s372_s19, %s372_s19 }
  0x2f   :  { %p586_p0 = scmp.ne.s32.totalorder %s372_s19, %s585_s20  ;;  %p591_p2 = scmp.lt.s32.totalorder %s585_s20, %s585_s20 }
  0x31   :  { %565 = vmatpush3.bf16.msra.mxu0 %v564_v7  ;;  %p592_p3 = por %p591_p2, %p590_p1 }
  0x32   :  { %567 = vmatprep.subr.bf16.mxu0 %v566_v8 }
  0x33   :  { %p593_p4 = pnand %p592_p3, %p586_p0 }
  0x35   :  { %569 = vmatpush3.bf16.msra.mxu0 %v568_v13 }
  0x36   :  { %571 = vmatprep.subr.bf16.mxu0 %v570_v14 }
  0x39   :  { %573 = vmatpush3.bf16.msra.mxu0 %v572_v19 }
  0x3a   :  { %575 = vmatprep.subr.bf16.mxu0 %v574_v20 }
  0x3d   :  { %577 = vmatpush3.bf16.msra.mxu0 %v576_v25 }
  0x3e   :  { %579 = vmatprep.subr.bf16.mxu0 %v578_v26 }
  0x41   :  { %581 = vmatpush3.bf16.msra.mxu0 %v580_v29 }
  0x44   :  { %358 = vmatmul.mubr.f32.vlgmr.msra.gmra.mrb[2].mxu0 %v380_v52 }
  0xf7   :  { %v413_v30 = vpop.f32.mrb[0].mxu0 }
  0xf8   :  { %v414_v32 = vpop.f32.mrb[1].mxu0 }
  0xf9   :  { %v448_v33 = vpop.f32.mrb[0].mxu1  ;;  %v415_v34 = vadd.f32 %v414_v32, %v413_v30 }
  0xfa   :  { %v449_v35 = vpop.f32.mrb[1].mxu1 }
  0xfb   :  { %v450_v36 = vadd.f32 %v449_v35, %v448_v33  ;;  %v220_v37 = vadd.f32 %v415_v34, %v379_v31 }
  0xfd   :  { %v290_v38 = vadd.f32 %v450_v36, %v220_v37 }
 0x117   :  { %v483_v39 = vpop.f32.mrb[2].mxu0 }
 0x118   :  { %v484_v40 = vpop.f32.mrb[3].mxu0 }
 0x119   :  { %v485_v41 = vadd.f32 %v484_v40, %v483_v39 }
 0x11b   :  { %v360_v42 = vadd.f32 %v485_v41, %v290_v38 }
 0x11d   :  { %364 = vst.msk [vmem:[#allocation2] sm:$0x3] %vm363_vm0, %v360_v42 }
 0x11e   :  { %596 = shalt.err (!%p593_p4)
}
 0x11f   :  { %s597_s22 = scalar_lea.hbm %s943_s3, 32 }
 0x120   :  { %p598_p5 = scmp.ne.s32.totalorder %s943_s3, %s597_s22  ;;  %p601_p6 = scmp.lt.u32.totalorder %s597_s22, %s943_s3 }
 0x122   :  { %p603_p7 = pnand %p601_p6, %p598_p5 }
 0x124   :  { %606 = shalt.err (!%p603_p7)
}
 0x125   :  { %374 = dma.vmem_to_hbm [thread:$0]  %s372_s19, 32, %s943_s3, [#allocation3]  }
 0x126   :  { %607 = dma.done.wait [#allocation3], 32  }
 0x127   :  { %608 = vsyncadd [#allocation3], 4294967264 }
 0x128   :  { %378 = vsyncpa [#allocation3], 1 }

</bundles_post_ra>
